<compile_context>
chip_gen: v6e
topology: v6e:2x2x1
jax: 0.10.0
libtpu: 0.0.40
codegen_flags: <defaults>
</compile_context>

<pallas_src>
import jax
import jax.numpy as jnp
from jax.experimental import pallas as pl
from jax.experimental.pallas import tpu as pltpu


# --------------------------------------------------------------------------- #
# helpers
# --------------------------------------------------------------------------- #
def _round_up(n, m):
    return -(-n // m) * m


def _itemsize(dt):
    return jax.dtypes.canonicalize_dtype(dt).itemsize


def _vmem_budget_and_limit():
    """(tiling budget, vmem_limit_bytes) per TPU generation."""
    cap = None
    try:
        info = pltpu.get_tpu_info()
        cap = getattr(info, "vmem_capacity_bytes", None)
    except Exception:
        cap = None
    if cap is None:
        cap = 64 * 1024 * 1024                      # unknown -> v7x-safe
    if cap <= 72 * 1024 * 1024:                     # v7x-class: 64 MiB physical
        return 36 * 1024 * 1024, 44 * 1024 * 1024
    return 88 * 1024 * 1024, 100 * 1024 * 1024      # v5e / v6e: 128 MiB physical


def _auto_block_q(Q, *, H, D, Cv, pair_shapes_itemsizes, compute_itemsize,
                  out_itemsize, q_mult, budget):
    """Largest q-tile (multiple of q_mult, dividing Q) fitting the VMEM budget.

    Accounts for every buffer: the double-buffered pair / gate / output
    streams, the per-batch-resident v block and the weights (with lane padding
    for D < 128), plus the f32 softmax temporaries."""
    lane = lambda n: _round_up(max(n, 1), 128)
    sub = lambda n: _round_up(max(n, 1), 8)
    nbuf = 2                                        # default double buffering

    fixed = 0
    fixed += nbuf * H * sub(Q) * lane(D) * compute_itemsize       # v (per-batch resident)
    fixed += nbuf * H * sub(D) * lane(Cv) * compute_itemsize      # wo (resident)
    fixed += nbuf * 8 * lane(Q) * 4                               # mask (tiny)

    per_row = 0
    for (Bp, Hp, Qp, Kp), isz in pair_shapes_itemsizes:
        if Qp == Q and Q > 1:
            per_row += nbuf * Hp * lane(Kp) * isz                 # q-tiled stream
        else:
            fixed += nbuf * Hp * sub(Qp) * lane(Kp) * isz         # fixed-size block
    per_row += nbuf * H * lane(D) * compute_itemsize              # gate stream
    per_row += nbuf * lane(Cv) * out_itemsize                     # output stream
    per_row += H * lane(Q) * (2 * 4 + 2)                          # f32 bias+p, bf16 p
    per_row += H * lane(D) * (4 + 4 + 2)                          # o / gated temps

    avail = budget - fixed
    if avail <= per_row * q_mult:
        return Q                                    # one q-tile per batch (always legal)
    tq = int(min(avail // per_row, Q, 2048))
    tq -= tq % q_mult
    while tq >= q_mult and Q % tq:
        tq -= q_mult
    if tq < q_mult or Q % tq:
        tq = Q
    return tq


# --------------------------------------------------------------------------- #
# kernel
# --------------------------------------------------------------------------- #
def _make_kernel(*, num_pair, has_mask, no_heads, c_hidden, compute_dtype):
    H, D = no_heads, c_hidden

    def kernel(*refs):
        # ref order: [mask?], pair_0..pair_{n-1}, v, g, wo, out
        i = 0
        mask_ref = None
        if has_mask:
            mask_ref = refs[i]; i += 1
        pair_refs = refs[i:i + num_pair]; i += num_pair
        v_ref, g_ref, wo_ref, out_ref = refs[i:i + 4]

        tq = out_ref.shape[1]       # q-tile size (static)
        K = v_ref.shape[2]          # key length == Q (static)

        # ---- bias sum (f32); size-1 head / query dims broadcast on-chip ----
        if num_pair:
            b32 = jnp.broadcast_to(pair_refs[0][0].astype(jnp.float32),
                                   (H, tq, K))
            for p_ref in pair_refs[1:]:
                b32 = b32 + p_ref[0].astype(jnp.float32)
            if has_mask:
                b32 = b32 + mask_ref[0, 0].astype(jnp.float32)   # [1, K] row bias
        else:
            b32 = jnp.broadcast_to(mask_ref[0, 0].astype(jnp.float32),
                                   (H, tq, K))

        # ---- bias-only softmax (normalization deferred) ---------------------
        # NOTE: a fully -inf row yields NaN, exactly like the torch reference.
        m = jnp.max(b32, axis=-1, keepdims=True)                  # [H, TQ, 1]
        p = jnp.exp(b32 - m)                                      # [H, TQ, K] f32
        l = jnp.sum(p, axis=-1, keepdims=True)                    # [H, TQ, 1]

        # ---- attention: one batched MXU contraction over heads --------------
        o = jnp.einsum('hqk,hkd->hqd', p.astype(compute_dtype), v_ref[0],
                       preferred_element_type=jnp.float32)        # [H, TQ, D] f32
        # deferred softmax denominator (EUP reciprocal, exact)
        o = o * pl.reciprocal(l, approx=False)

        # ---- gate (bf16 streamed, f32 multiply) + per-head output proj ------
        og = (o * g_ref[0].astype(jnp.float32)).astype(compute_dtype)  # [H, TQ, D]
        acc = jnp.dot(og[0], wo_ref[0], preferred_element_type=jnp.float32)
        for h in range(1, H):                                     # static unroll
            acc = acc + jnp.dot(og[h], wo_ref[h],
                                preferred_element_type=jnp.float32)
        out_ref[0] = acc.astype(out_ref.dtype)

    return kernel


# --------------------------------------------------------------------------- #
# wrapper
# --------------------------------------------------------------------------- #
def bias_attention(x, biases, wv, wg, wo, *, no_heads: int, c_hidden: int,
                   block_q=None, compute_dtype=jnp.bfloat16,
                   bias_dtype=jnp.bfloat16):
    """x: [B, Q, C_v]; biases: list of arrays broadcastable to [B, H, Q, Q]
    (each dim must be 1 or the full size). Weights are right-multiply
    matrices: wv, wg: [C_v, H*D]; wo: [H*D, C_v].

    bias_dtype: streaming dtype for the pair-style biases (None = keep as-is).
    """
    if biases is None or len(biases) == 0:
        raise ValueError("Biases must be provided")
    B, Q, Cv = x.shape
    H, D = no_heads, c_hidden
    HD = H * D
    assert wv.shape == (Cv, HD) and wg.shape == (Cv, HD) and wo.shape == (HD, Cv)

    # ---- classify biases; keep natural (non-broadcast) shapes in HBM --------
    def to4d(b):
        if b.ndim > 4:
            raise ValueError("biases must have at most 4 dims ([B?, H?, Q?, K])")
        return b.reshape((1,) * (4 - b.ndim) + tuple(b.shape))

    row_biases, pair_biases = [], []
    for b in biases:
        b4 = to4d(b)
        for dim, full in zip(b4.shape, (B, H, Q, Q)):
            if dim not in (1, full):
                raise ValueError(f"bias shape {b.shape} does not broadcast to "
                                 f"{(B, H, Q, Q)}")
        if b4.shape[-3] == 1 and b4.shape[-2] == 1:
            row_biases.append(b4)           # mask-style: [B?, 1, 1, K?]
        else:
            pair_biases.append(b4)          # pair-style: the big stream

    has_mask = bool(row_biases)
    mask = None
    if has_mask:
        mask = row_biases[0]
        for rb in row_biases[1:]:
            mask = mask + rb                # tiny, summed once in the wrapper
        mask = mask.astype(jnp.float32)

    # Stream the dominant pair-bias in bf16 (callers already producing bf16 pay
    # nothing; the convert fuses into the bias producer under jit).
    if bias_dtype is not None:
        pair_biases = [p.astype(bias_dtype) for p in pair_biases]
    num_pair = len(pair_biases)

    # ---- hoist v / gate projections (removes in-kernel scratch + q-serialism)
    xf = x.astype(jnp.float32)
    v = (xf @ wv.astype(jnp.float32)).reshape(B, Q, H, D)
    v = jnp.transpose(v, (0, 2, 1, 3)).astype(compute_dtype)       # [B, H, K, D]
    g = jax.nn.sigmoid(xf @ wg.astype(jnp.float32)).reshape(B, Q, H, D)
    g = jnp.transpose(g, (0, 2, 1, 3)).astype(compute_dtype)       # [B, H, Q, D]
    wo_r = wo.reshape(H, D, Cv).astype(compute_dtype)               # head-major

    # ---- q-tile size ---------------------------------------------------------
    min_isz = min([_itemsize(compute_dtype), x.dtype.itemsize]
                  + [p.dtype.itemsize for p in pair_biases])
    q_mult = {1: 32, 2: 16}.get(min_isz, 8)
    budget, vmem_limit = _vmem_budget_and_limit()
    if block_q is None:
        block_q = _auto_block_q(
            Q, H=H, D=D, Cv=Cv,
            pair_shapes_itemsizes=[(p.shape, p.dtype.itemsize)
                                   for p in pair_biases],
            compute_itemsize=_itemsize(compute_dtype),
            out_itemsize=x.dtype.itemsize,
            q_mult=q_mult, budget=budget)
    if Q % block_q != 0 or (block_q != Q and block_q % q_mult != 0):
        raise ValueError(f"block_q={block_q} must divide Q={Q} and be a "
                         f"multiple of {q_mult} (or equal Q)")
    n_q = Q // block_q

    # If every pair bias is batch-shared, iterate q on the OUTER grid axis so a
    # shared bias tile is fetched once per q-tile instead of once per (b, q).
    q_outer = (B > 1 and num_pair > 0
               and all(p.shape[0] == 1 for p in pair_biases))
    grid = (n_q, B) if q_outer else (B, n_q)

    def _bq(i, j):
        return (j, i) if q_outer else (i, j)

    # ---- BlockSpecs: size-1 batch / query dims broadcast via index_map -------
    in_specs, inputs = [], []
    if has_mask:
        Bm, Km = mask.shape[0], mask.shape[-1]

        def mask_idx(i, j, _bm=Bm):
            b, q = _bq(i, j)
            return ((b if _bm != 1 else 0), 0, 0, 0)

        in_specs.append(pl.BlockSpec((1, 1, 1, Km), mask_idx))
        inputs.append(mask)

    for p in pair_biases:
        Bp, Hp, Qp, Kp = p.shape
        bq_blk = block_q if Qp == Q else 1

        def pair_idx(i, j, _bp=Bp, _qp=Qp):
            b, q = _bq(i, j)
            return ((b if _bp != 1 else 0), 0, (q if _qp != 1 else 0), 0)

        in_specs.append(pl.BlockSpec((1, Hp, bq_blk, Kp), pair_idx))
        inputs.append(p)

    def v_idx(i, j):
        b, q = _bq(i, j)
        return (b, 0, 0, 0)

    def g_idx(i, j):
        b, q = _bq(i, j)
        return (b, 0, q, 0)

    def o_idx(i, j):
        b, q = _bq(i, j)
        return (b, q, 0)

    in_specs += [
        pl.BlockSpec((1, H, Q, D), v_idx),            # v: all keys, per batch
        pl.BlockSpec((1, H, block_q, D), g_idx),      # gate: q-tiled stream
        pl.BlockSpec((H, D, Cv), lambda i, j: (0, 0, 0)),   # wo: resident
    ]
    inputs += [v, g, wo_r]
    out_spec = pl.BlockSpec((1, block_q, Cv), o_idx)

    kernel = _make_kernel(num_pair=num_pair, has_mask=has_mask,
                          no_heads=H, c_hidden=D, compute_dtype=compute_dtype)

    # advisory cost estimate so XLA can overlap surrounding ops with the kernel
    pair_bytes = sum(int(p.size) * p.dtype.itemsize for p in pair_biases)
    mask_bytes = int(mask.size) * 4 if has_mask else 0
    cost = pl.CostEstimate(
        flops=int(2 * B * H * Q * Q * D + 2 * B * Q * HD * Cv),
        transcendentals=int(B * H * Q * Q),
        bytes_accessed=int(pair_bytes + mask_bytes
                           + int(v.size) * v.dtype.itemsize
                           + int(g.size) * g.dtype.itemsize
                           + int(wo_r.size) * wo_r.dtype.itemsize
                           + B * Q * Cv * x.dtype.itemsize),
    )

    return pl.pallas_call(
        kernel,
        out_shape=jax.ShapeDtypeStruct((B, Q, Cv), x.dtype),
        grid_spec=pltpu.PrefetchScalarGridSpec(
            num_scalar_prefetch=0,
            grid=grid,
            in_specs=in_specs,
            out_specs=out_spec),
        compiler_params=pltpu.CompilerParams(
            # no cross-step state any more: both axes shard across TensorCores
            dimension_semantics=("parallel", "parallel"),
            vmem_limit_bytes=vmem_limit),
        cost_estimate=cost,
    )(*inputs)


# --------------------------------------------------------------------------- #
# pure-JAX reference (mirrors the torch forward) + self-test
# --------------------------------------------------------------------------- #
def _reference(x, biases, wv, wg, wo, *, no_heads, c_hidden):
    B, Q, Cv = x.shape
    H, D = no_heads, c_hidden
    v = (x @ wv).reshape(B, Q, H, D).transpose(0, 2, 1, 3)          # [B, H, K, D]
    a = sum(jnp.broadcast_to(
        b.reshape((1,) * (4 - b.ndim) + tuple(b.shape)), (B, H, Q, Q))
        .astype(jnp.float32) for b in biases)
    a = jax.nn.softmax(a, axis=-1)
    o = jnp.einsum('bhqk,bhkd->bhqd', a, v).transpose(0, 2, 1, 3)   # [B, Q, H, D]
    g = jax.nn.sigmoid(x @ wg).reshape(B, Q, H, D)
    return ((o * g).reshape(B, Q, H * D)) @ wo


if __name__ == "__main__":
    # Module hyperparameters (small, consistent with the forward pass).
    c_v, c_hidden, no_heads = 16, 8, 4
    B, Q = 2, 32

    key = jax.random.PRNGKey(0)
    k_x, k_b1, k_b2, k_wv, k_wg, k_wo = jax.random.split(key, 6)

    x = jax.random.normal(k_x, (B, Q, c_v), dtype=jnp.float32)
    # Row-style mask bias (per-batch) + pair bias with a size-1 batch dim so the
    # index_map broadcast / q-outer-grid path is exercised without any HBM copy.
    bias_mask = jax.random.normal(k_b1, (B, 1, 1, Q), dtype=jnp.float32)
    bias_pair = jax.random.normal(k_b2, (1, no_heads, Q, Q), dtype=jnp.float32)

    HD = c_hidden * no_heads
    scale = 0.05
    wv = scale * jax.random.normal(k_wv, (c_v, HD), dtype=jnp.float32)
    wg = scale * jax.random.normal(k_wg, (c_v, HD), dtype=jnp.float32)
    wo = scale * jax.random.normal(k_wo, (HD, c_v), dtype=jnp.float32)

    ref = _reference(x, [bias_mask, bias_pair], wv, wg, wo,
                     no_heads=no_heads, c_hidden=c_hidden)

    # (a) explicit q-tile + batch-shared pair bias -> q-outer grid, 2 q-tiles
    out_tiled = jax.block_until_ready(
        bias_attention(x, [bias_mask, bias_pair], wv, wg, wo,
                       no_heads=no_heads, c_hidden=c_hidden, block_q=16))
    # (b) auto q-tile + full-batch pair bias -> b-outer grid path
    out_auto = jax.block_until_ready(
        bias_attention(x, [bias_mask,
                           jnp.broadcast_to(bias_pair, (B, no_heads, Q, Q))],
                       wv, wg, wo, no_heads=no_heads, c_hidden=c_hidden))
    # (c) single pair-style bias, no mask -> has_mask=False kernel variant
    ref_single = _reference(x, [bias_pair], wv, wg, wo,
                            no_heads=no_heads, c_hidden=c_hidden)
    out_single = jax.block_until_ready(
        bias_attention(x, [bias_pair], wv, wg, wo,
                       no_heads=no_heads, c_hidden=c_hidden))

    for out, expect in ((out_tiled, ref), (out_auto, ref), (out_single, ref_single)):
        assert out.shape == (B, Q, c_v)
        assert bool(jnp.all(jnp.isfinite(out)))
        # bf16 bias / value / gate streams -> loose-ish tolerance.
        assert jnp.allclose(out, expect, atol=2e-2, rtol=2e-2), \
            float(jnp.max(jnp.abs(out - expect)))

    print("KERNEL_OK")
</pallas_src>

<mosaic_0001>
module attributes {stable_mosaic.version = 11 : i64} {
  func.func @kernel(%arg0: i32, %arg1: i32, %arg2: memref<1x1x1x32xf32, #tpu.memory_space<vmem>>, %arg3: memref<1x4x16x32xbf16, #tpu.memory_space<vmem>>, %arg4: memref<1x4x32x8xbf16, #tpu.memory_space<vmem>>, %arg5: memref<1x4x16x8xbf16, #tpu.memory_space<vmem>>, %arg6: memref<4x8x16xbf16, #tpu.memory_space<vmem>>, %arg7: memref<1x16x16xf32, #tpu.memory_space<vmem>>) attributes {dimension_semantics = [#tpu.dimension_semantics<parallel>, #tpu.dimension_semantics<parallel>], iteration_bounds = array<i64: 2, 2>, scalar_prefetch = 0 : i64, scratch_operands = 0 : i64, tpu.core_type = #tpu.core_type<tc>, window_params = [{transform_indices = @transform_0, window_bounds = array<i64: 1, 1, 1, 32>}, {transform_indices = @transform_1, window_bounds = array<i64: 1, 4, 16, 32>}, {transform_indices = @transform_2, window_bounds = array<i64: 1, 4, 32, 8>}, {transform_indices = @transform_3, window_bounds = array<i64: 1, 4, 16, 8>}, {pipeline_mode = #tpu.pipeline_mode<synchronous>, transform_indices = @transform_4, window_bounds = array<i64: 4, 8, 16>}, {transform_indices = @transform_5, window_bounds = array<i64: 1, 16, 16>}]} {
    %c0 = arith.constant 0 : index
    %c0_0 = arith.constant 0 : index
    %c0_1 = arith.constant 0 : index
    %c0_2 = arith.constant 0 : index
    %0 = vector.load %arg3[%c0, %c0_0, %c0_1, %c0_2] : memref<1x4x16x32xbf16, #tpu.memory_space<vmem>>, vector<1x4x16x32xbf16>
    %1 = vector.shape_cast %0 : vector<1x4x16x32xbf16> to vector<4x16x32xbf16>
    %2 = arith.extf %1 : vector<4x16x32xbf16> to vector<4x16x32xf32>
    %c0_3 = arith.constant 0 : index
    %c0_4 = arith.constant 0 : index
    %c0_5 = arith.constant 0 : index
    %c0_6 = arith.constant 0 : index
    %3 = vector.load %arg2[%c0_3, %c0_4, %c0_5, %c0_6] : memref<1x1x1x32xf32, #tpu.memory_space<vmem>>, vector<1x1x1x32xf32>
    %4 = vector.shape_cast %3 : vector<1x1x1x32xf32> to vector<1x32xf32>
    %5 = vector.shape_cast %4 : vector<1x32xf32> to vector<1x1x32xf32>
    %6 = vector.broadcast %5 : vector<1x1x32xf32> to vector<4x16x32xf32>
    %7 = arith.addf %2, %6 : vector<4x16x32xf32>
    %cst = arith.constant dense<0xFF800000> : vector<4x16xf32>
    %8 = vector.multi_reduction <maximumf>, %7, %cst [2] : vector<4x16x32xf32> to vector<4x16xf32>
    %9 = vector.shape_cast %8 : vector<4x16xf32> to vector<4x16x1xf32>
    %10 = vector.broadcast %9 : vector<4x16x1xf32> to vector<4x16x32xf32>
    %11 = arith.subf %7, %10 : vector<4x16x32xf32>
    %12 = math.exp %11 : vector<4x16x32xf32>
    %cst_7 = arith.constant dense<0.000000e+00> : vector<4x16xf32>
    %13 = vector.multi_reduction <add>, %12, %cst_7 [2] : vector<4x16x32xf32> to vector<4x16xf32>
    %14 = vector.shape_cast %13 : vector<4x16xf32> to vector<4x16x1xf32>
    %15 = arith.truncf %12 : vector<4x16x32xf32> to vector<4x16x32xbf16>
    %c0_8 = arith.constant 0 : index
    %c0_9 = arith.constant 0 : index
    %c0_10 = arith.constant 0 : index
    %c0_11 = arith.constant 0 : index
    %16 = vector.load %arg4[%c0_8, %c0_9, %c0_10, %c0_11] : memref<1x4x32x8xbf16, #tpu.memory_space<vmem>>, vector<1x4x32x8xbf16>
    %17 = vector.shape_cast %16 : vector<1x4x32x8xbf16> to vector<4x32x8xbf16>
    "tpu.trace_start"() <{level = 10 : i32, message = "hqk,hkd->hqd"}> : () -> ()
    %cst_12 = arith.constant dense<0.000000e+00> : vector<4x16x8xf32>
    %18 = tpu.matmul %15, %17, %cst_12 {dimension_numbers = #tpu.dot_dimension_numbers<[2], [1], [1], [2], [0, 0, 0, 1, 1, 2], [0], [0]>} : vector<4x16x32xbf16>, vector<4x32x8xbf16>, vector<4x16x8xf32> -> vector<4x16x8xf32>
    "tpu.trace_stop"() : () -> ()
    %19 = tpu.reciprocal %14 : vector<4x16x1xf32> -> vector<4x16x1xf32>
    %20 = vector.broadcast %19 : vector<4x16x1xf32> to vector<4x16x8xf32>
    %21 = arith.mulf %18, %20 : vector<4x16x8xf32>
    %c0_13 = arith.constant 0 : index
    %c0_14 = arith.constant 0 : index
    %c0_15 = arith.constant 0 : index
    %c0_16 = arith.constant 0 : index
    %22 = vector.load %arg5[%c0_13, %c0_14, %c0_15, %c0_16] : memref<1x4x16x8xbf16, #tpu.memory_space<vmem>>, vector<1x4x16x8xbf16>
    %23 = vector.shape_cast %22 : vector<1x4x16x8xbf16> to vector<4x16x8xbf16>
    %24 = arith.extf %23 : vector<4x16x8xbf16> to vector<4x16x8xf32>
    %25 = arith.mulf %21, %24 : vector<4x16x8xf32>
    %26 = arith.truncf %25 : vector<4x16x8xf32> to vector<4x16x8xbf16>
    %27 = vector.extract_strided_slice %26 {offsets = [0, 0, 0], sizes = [1, 16, 8], strides = [1, 1, 1]} : vector<4x16x8xbf16> to vector<1x16x8xbf16>
    %28 = vector.shape_cast %27 : vector<1x16x8xbf16> to vector<16x8xbf16>
    %c0_17 = arith.constant 0 : index
    %c0_18 = arith.constant 0 : index
    %c0_19 = arith.constant 0 : index
    %29 = vector.load %arg6[%c0_17, %c0_18, %c0_19] : memref<4x8x16xbf16, #tpu.memory_space<vmem>>, vector<1x8x16xbf16>
    %30 = vector.shape_cast %29 : vector<1x8x16xbf16> to vector<8x16xbf16>
    %cst_20 = arith.constant dense<0.000000e+00> : vector<16x16xf32>
    %31 = tpu.matmul %28, %30, %cst_20 {dimension_numbers = #tpu.dot_dimension_numbers<[1], [0], [0], [1], [0, 0, 1, 1], [], []>} : vector<16x8xbf16>, vector<8x16xbf16>, vector<16x16xf32> -> vector<16x16xf32>
    %32 = vector.extract_strided_slice %26 {offsets = [1, 0, 0], sizes = [1, 16, 8], strides = [1, 1, 1]} : vector<4x16x8xbf16> to vector<1x16x8xbf16>
    %33 = vector.shape_cast %32 : vector<1x16x8xbf16> to vector<16x8xbf16>
    %c1 = arith.constant 1 : index
    %c0_21 = arith.constant 0 : index
    %c0_22 = arith.constant 0 : index
    %34 = vector.load %arg6[%c1, %c0_21, %c0_22] : memref<4x8x16xbf16, #tpu.memory_space<vmem>>, vector<1x8x16xbf16>
    %35 = vector.shape_cast %34 : vector<1x8x16xbf16> to vector<8x16xbf16>
    %cst_23 = arith.constant dense<0.000000e+00> : vector<16x16xf32>
    %36 = tpu.matmul %33, %35, %cst_23 {dimension_numbers = #tpu.dot_dimension_numbers<[1], [0], [0], [1], [0, 0, 1, 1], [], []>} : vector<16x8xbf16>, vector<8x16xbf16>, vector<16x16xf32> -> vector<16x16xf32>
    %37 = arith.addf %31, %36 : vector<16x16xf32>
    %38 = vector.extract_strided_slice %26 {offsets = [2, 0, 0], sizes = [1, 16, 8], strides = [1, 1, 1]} : vector<4x16x8xbf16> to vector<1x16x8xbf16>
    %39 = vector.shape_cast %38 : vector<1x16x8xbf16> to vector<16x8xbf16>
    %c2 = arith.constant 2 : index
    %c0_24 = arith.constant 0 : index
    %c0_25 = arith.constant 0 : index
    %40 = vector.load %arg6[%c2, %c0_24, %c0_25] : memref<4x8x16xbf16, #tpu.memory_space<vmem>>, vector<1x8x16xbf16>
    %41 = vector.shape_cast %40 : vector<1x8x16xbf16> to vector<8x16xbf16>
    %cst_26 = arith.constant dense<0.000000e+00> : vector<16x16xf32>
    %42 = tpu.matmul %39, %41, %cst_26 {dimension_numbers = #tpu.dot_dimension_numbers<[1], [0], [0], [1], [0, 0, 1, 1], [], []>} : vector<16x8xbf16>, vector<8x16xbf16>, vector<16x16xf32> -> vector<16x16xf32>
    %43 = arith.addf %37, %42 : vector<16x16xf32>
    %44 = vector.extract_strided_slice %26 {offsets = [3, 0, 0], sizes = [1, 16, 8], strides = [1, 1, 1]} : vector<4x16x8xbf16> to vector<1x16x8xbf16>
    %45 = vector.shape_cast %44 : vector<1x16x8xbf16> to vector<16x8xbf16>
    %c3 = arith.constant 3 : index
    %c0_27 = arith.constant 0 : index
    %c0_28 = arith.constant 0 : index
    %46 = vector.load %arg6[%c3, %c0_27, %c0_28] : memref<4x8x16xbf16, #tpu.memory_space<vmem>>, vector<1x8x16xbf16>
    %47 = vector.shape_cast %46 : vector<1x8x16xbf16> to vector<8x16xbf16>
    %cst_29 = arith.constant dense<0.000000e+00> : vector<16x16xf32>
    %48 = tpu.matmul %45, %47, %cst_29 {dimension_numbers = #tpu.dot_dimension_numbers<[1], [0], [0], [1], [0, 0, 1, 1], [], []>} : vector<16x8xbf16>, vector<8x16xbf16>, vector<16x16xf32> -> vector<16x16xf32>
    %49 = arith.addf %43, %48 : vector<16x16xf32>
    %c0_30 = arith.constant 0 : index
    %c0_31 = arith.constant 0 : index
    %c0_32 = arith.constant 0 : index
    %50 = vector.load %arg7[%c0_30, %c0_31, %c0_32] : memref<1x16x16xf32, #tpu.memory_space<vmem>>, vector<1x16x16xf32>
    %51 = vector.shape_cast %50 : vector<1x16x16xf32> to vector<16x16xf32>
    %52 = vector.shape_cast %49 : vector<16x16xf32> to vector<1x16x16xf32>
    tpu.vector_store %arg7[%c0_30, %c0_31, %c0_32], %52 {strides = array<i32>} : memref<1x16x16xf32, #tpu.memory_space<vmem>>, vector<1x16x16xf32>,
    return
  }
  func.func @transform_0(%arg0: i32, %arg1: i32) -> (i32, i32, i32, i32) {
    %c0_i32 = arith.constant 0 : i32
    %c0_i32_0 = arith.constant 0 : i32
    %c0_i32_1 = arith.constant 0 : i32
    %c0_i32_2 = arith.constant 0 : i32
    return %arg1, %c0_i32, %c0_i32_0, %c0_i32_1 : i32, i32, i32, i32
  }
  func.func @transform_1(%arg0: i32, %arg1: i32) -> (i32, i32, i32, i32) {
    %c0_i32 = arith.constant 0 : i32
    %c0_i32_0 = arith.constant 0 : i32
    %c0_i32_1 = arith.constant 0 : i32
    %c0_i32_2 = arith.constant 0 : i32
    return %c0_i32, %c0_i32_0, %arg0, %c0_i32_1 : i32, i32, i32, i32
  }
  func.func @transform_2(%arg0: i32, %arg1: i32) -> (i32, i32, i32, i32) {
    %c0_i32 = arith.constant 0 : i32
    %c0_i32_0 = arith.constant 0 : i32
    %c0_i32_1 = arith.constant 0 : i32
    %c0_i32_2 = arith.constant 0 : i32
    return %arg1, %c0_i32, %c0_i32_0, %c0_i32_1 : i32, i32, i32, i32
  }
  func.func @transform_3(%arg0: i32, %arg1: i32) -> (i32, i32, i32, i32) {
    %c0_i32 = arith.constant 0 : i32
    %c0_i32_0 = arith.constant 0 : i32
    %c0_i32_1 = arith.constant 0 : i32
    return %arg1, %c0_i32, %arg0, %c0_i32_0 : i32, i32, i32, i32
  }
  func.func @transform_4(%arg0: i32, %arg1: i32) -> (i32, i32, i32) {
    %c0_i32 = arith.constant 0 : i32
    %c0_i32_0 = arith.constant 0 : i32
    %c0_i32_1 = arith.constant 0 : i32
    %c0_i32_2 = arith.constant 0 : i32
    return %c0_i32, %c0_i32_0, %c0_i32_1 : i32, i32, i32
  }
  func.func @transform_5(%arg0: i32, %arg1: i32) -> (i32, i32, i32) {
    %c0_i32 = arith.constant 0 : i32
    %c0_i32_0 = arith.constant 0 : i32
    return %arg1, %arg0, %c0_i32 : i32, i32, i32
  }
}

</mosaic_0001>

<bundles_post_ra>
// kernel: tpu_custom_call.1
= control target key start
LH: loop header
LB: loop body
LE: loop exit
PB: predicated region body
PF: predicated region fallthrough
CT: control target
= control target key end

     0   :  { %s1556_s18 = smov 0   ;;  %s1558_s19 = smov 0   ;;  %s1775_s0 = inlined_call_operand.vmem [shape: f32[2,1,1,32], index: 0, kind: input, shape index: {}]   ;;  %s1776_s1 = inlined_call_operand.vmem [shape: bf16[1,4,32,32], index: 1, kind: input, shape index: {}]   ;;  %s1777_s2 = inlined_call_operand.vmem [shape: bf16[2,4,32,8], index: 2, kind: input, shape index: {}]   ;;  %s1778_s3 = inlined_call_operand.vmem [shape: bf16[2,4,32,8], index: 3, kind: input, shape index: {}]   ;;  %s1779_s4 = inlined_call_operand.vmem [shape: bf16[4,8,16], index: 4, kind: input, shape index: {}]   ;;  %s1780_s5 = inlined_call_operand.vmem [shape: f32[2,32,16], index: 5, kind: output, shape index: {}]  }
   0x1   :  { %s1560_s20 = smov 0   ;;  %s1562_s21 = smov 0  }
   0x2   :  { %s1564_s22 = smov 0   ;;  %s1566_s23 = smov 0  }
   0x3   :  { %s1568_s24 = smov 0   ;;  %s1570_s25 = smov 0  }
   0x4   :  { %s1572_s26 = smov 0  }
   0x5 LB: > { %s24_s27 = sadd.s32 1, %s1514_s24  ;;  %s27_s28 = sadd.s32 1, %s1518_s25  ;;  %s1522_s26 = sphi %s1572_s26, %s15_s26   ;;  %s1518_s25 = sphi %s1570_s25, %s1790_s25   ;;  %s1514_s24 = sphi %s1568_s24, %s1789_s24   ;;  %s1510_s23 = sphi %s1566_s23, %s1788_s23   ;;  %s1506_s22 = sphi %s1564_s22, %s1787_s22   ;;  %s1502_s21 = sphi %s1562_s21, %s1786_s21   ;;  %s1498_s20 = sphi %s1560_s20, %s1785_s20   ;;  %s1494_s19 = sphi %s1558_s19, %s1784_s19   ;;  %s1490_s18 = sphi %s1556_s18, %s1783_s18  }
   0x6   : > { %p25_p0 = scmp.ge.s32.totalorder %s24_s27, 2  ;;  %p67_p1 = scmp.ne.s32.totalorder %s1502_s21, %s1498_s20 }
   0x7   : > { %p68_p2 = scmp.eq.s32.totalorder %s1522_s26, 0  ;;  %p121_p5 = scmp.ne.s32.totalorder %s1494_s19, %s1490_s18 }
   0x8   : > { %s1792_s27 = smov (%p25_p0, %s24_s27), 0  ;;  %s1794_s28 = smov (!%p25_p0, %s27_s28), %s1518_s25 }
   0x9   : > { %p1609_p3 = por %p68_p2, %p67_p1  ;;  %p29_p4 = scmp.ge.s32.totalorder %s1794_s28, 2 }
   0xa   : > { %s109_s30 = ssub.s32 %s1514_s24, %s1792_s27  ;;  %s60_s6 = sadd.s32 1, %s1502_s21 }
   0xb   : > { %s1796_s28 = smov (%p29_p4, %s1794_s28), 0  ;;  %p1620_p6 = por %p121_p5, %p68_p2 }
   0xc   : > { %s57_s8 = ssub.s32 %s1518_s25, %s1796_s28  ;;  %s114_s9 = sadd.s32 1, %s1494_s19 }
   0xd   : > { %p58_p7 = scmp.eq.s32.totalorder %s57_s8, 0  ;;  %s111_s10 = sor.u32 %s109_s30, %s57_s8 }
   0xe   : > { %p112_p8 = scmp.eq.s32.totalorder %s111_s10, 0  ;;  %p1184_p9 = scmp.ge.s32.totalorder %s1522_s26, 4 }
   0xf   : > { %s1628_s11 = scalar_select %p58_p7, %s1502_s21, %s60_s6  }
  0x10   : > { %s1631_s12 = scalar_select %p112_p8, %s1494_s19, %s114_s9  }
  0x11   : > { %199 = sbr.rel (%p1184_p9) target bundleno = 37 (0x25), region = 20 }
  0x16   : > { %208 = sbr.rel (!%p1609_p3) target bundleno = 28 (0x1c), region = 28  ;;  %s210_s13 = sand.u32 (%p1609_p3), 1, %s1502_s21  }
  0x17   : > { %s1222_s14 = sshll.u32 (%p1609_p3), %s1518_s25, 3  ;;  %s1185_s15 = sshll.u32 (%p1609_p3), %s210_s13, 5 }
  0x18   : > { %s215_s30 = scalar_lea.vmem (%p1609_p3), %s1776_s1, %s1222_s14  ;;  %s212_s6 = scalar_lea.vmem (%p1609_p3), [#allocation2], %s1185_s15 }
  0x19   : > { %v232_v0 = vld [vmem:[%s215_s30] sm:$0xff] (%p1609_p3)   ;;  %v236_v1 = vld [vmem:[%s215_s30 + $0x10] sm:$0xff] (%p1609_p3)  }
  0x1a   : > { %v240_v2 = vld [vmem:[%s215_s30 + $0x20] sm:$0xff] (%p1609_p3)   ;;  %233 = vst [vmem:[%s212_s6] sm:$0xff] (%p1609_p3), %v232_v0   ;;  %237 = vst [vmem:[%s212_s6 + $0x8] sm:$0xff] (%p1609_p3), %v236_v1   ;;  %v244_v3 = vld [vmem:[%s215_s30 + $0x30] sm:$0xff] (%p1609_p3)  }
  0x1b   : > { %241 = vst [vmem:[%s212_s6 + $0x10] sm:$0xff] %v240_v2   ;;  %245 = vst [vmem:[%s212_s6 + $0x18] sm:$0xff] %v244_v3  }
  0x1c PF: > { %295 = sbr.rel (!%p1620_p6) target bundleno = 37 (0x25), region = 73  ;;  %s297_s29 = sand.u32 (%p1620_p6), 1, %s1494_s19  }
  0x1d   : > { %s1189_s8 = sshll.u32 (%p1620_p6), %s1518_s25, 1  ;;  %s1188_s9 = sshll.u32 (%p1620_p6), %s297_s29, 5 }
  0x1e   : > { %s1190_s10 = sshll.u32 (%p1620_p6), %s1514_s24, 4  ;;  %s299_s30 = scalar_lea.vmem (%p1620_p6), [#allocation3], %s1188_s9 }
  0x1f   : > { %s302_s13 = sadd.s32 (%p1620_p6), %s1190_s10, %s1189_s8 }
  0x20   : > { %s1191_s14 = sshll.u32 (%p1620_p6), %s302_s13, 2 }
  0x21   : > { %s304_s17 = scalar_lea.vmem %s1778_s3, %s1191_s14 }
  0x22   : > { %v321_v4 = vld [vmem:[%s304_s17] sm:$0xff]   ;;  %v325_v5 = vld [vmem:[%s304_s17 + $0x10] sm:$0xff]  }
  0x23   : > { %v329_v6 = vld [vmem:[%s304_s17 + $0x20] sm:$0xff]   ;;  %322 = vst [vmem:[%s299_s30] sm:$0xff] %v321_v4   ;;  %326 = vst [vmem:[%s299_s30 + $0x8] sm:$0xff] %v325_v5   ;;  %v333_v7 = vld [vmem:[%s304_s17 + $0x30] sm:$0xff]  }
  0x24   : > { %330 = vst [vmem:[%s299_s30 + $0x10] sm:$0xff] %v329_v6   ;;  %334 = vst [vmem:[%s299_s30 + $0x18] sm:$0xff] %v333_v7  }
  0x25 PF: > { %p1192_p10 = scmp.ge.s32.totalorder %s1522_s26, 1  ;;  %p375_p11 = scmp.lt.s32.totalorder %s1522_s26, 5 }
  0x27   : > { %p376_p12 = pnand %p1192_p10, %p375_p11 }
  0x28   : > { %s382_s7 = sand.u32 (!%p376_p12), 1, %s1498_s20   ;;  %p432_p13 = scmp.lt.s32.totalorder (!%p376_p12), %s1506_s22, 1 }
  0x29   : > { %379 = sbr.rel (%p376_p12) target bundleno = 628 (0x274), region = 114  ;;  %s1193_s6 = sshll.u32 (!%p376_p12), %s382_s7, 5 }
  0x2a   : > { %s384_s29 = scalar_lea.vmem (!%p376_p12), [#allocation2], %s1193_s6  ;;  %s389_s6 = sand.u32 (!%p376_p12), 1, %s1490_s18  }
  0x2b   : > { %s1197_s20 = sshll.u32 (!%p376_p12), %s1510_s23, 1 }
  0x2c   : > { %p445_p0 = scmp.lt.s32.totalorder (!%p376_p12), %s1197_s20, 3 }
  0x2e   : > { %s1798_s22 = smov (!%p432_p13, %s1506_s22), 1  ;;  %v1256_v8 = vld [vmem:[%s384_s29 + $0x8] sm:$0xff]   ;;  %v1225_v9 = vld [vmem:[%s384_s29] sm:$0xff]   ;;  %v1257_v10 = vld [vmem:[%s384_s29 + $0x10] sm:$0xff]   ;;  %vm484_vm0 = vcmask 261120   ;;  %v1524_v39 = vmov 0.0  }
  0x2f   : > { %v1230_v11 = vunpack.c.l.bf16 %v1256_v8  ;;  %v1226_v12 = vunpack.c.l.bf16 %v1225_v9  ;;  %v1231_v13 = vunpack.c.h.bf16 %v1256_v8  ;;  %v1227_v14 = vunpack.c.h.bf16 %v1225_v9  ;;  %s434_s10 = scalar_lea.vmem %s1775_s0, %s1798_s22  ;;  %s1223_s13 = sshll.u32 %s1798_s22, 6  ;;  %v1258_v18 = vld [vmem:[%s384_s29 + $0x18] sm:$0xff]   ;;  %1282 = vmatprep.subr.bf16.mxu0 %v1524_v39  ;;  %1290 = vmatprep.subr.bf16.mxu1 %v1524_v39 }
  0x30   : > { %s1664_s16 = scalar_lea.vmem %s1777_s2, %s1223_s13  ;;  %v1200_v15 = vld [vmem:[%s434_s10] ss:$0 sm:$0xff]  ;;  %v1235_v16 = vunpack.c.h.bf16 %v1257_v10  ;;  %v1234_v17 = vunpack.c.l.bf16 %v1257_v10  ;;  %v1239_v29 = vunpack.c.h.bf16 %v1258_v18  ;;  %v1238_v30 = vunpack.c.l.bf16 %v1258_v18  ;;  %s1194_s29 = sshll.u32 %s389_s6, 5 }
  0x31   : > { %v478_v19 = vadd.f32 %v1230_v11, %v1200_v15  ;;  %v476_v20 = vadd.f32 %v1226_v12, %v1200_v15  ;;  %v479_v21 = vadd.f32 %v1231_v13, %v1200_v15  ;;  %v477_v22 = vadd.f32 %v1227_v14, %v1200_v15  ;;  %v1412_v37 = vld [vmem:[%s1664_s16 + $0x8] sm:$0xff]   ;;  %v1413_v38 = vld [vmem:[%s1664_s16 + $0x18] sm:$0xff]   ;;  %v1414_v40 = vld [vmem:[%s1664_s16] sm:$0xff]   ;;  %s391_s8 = scalar_lea.vmem [#allocation3], %s1194_s29  ;;  %s1800_s20 = smov (!%p445_p0, %s1197_s20), 3 }
  0x32   : > { %v481_v27 = vadd.f32 %v1235_v16, %v1200_v15  ;;  %v480_v28 = vadd.f32 %v1234_v17, %v1200_v15  ;;  %v483_v33 = vadd.f32 %v1239_v29, %v1200_v15  ;;  %v482_v34 = vadd.f32 %v1238_v30, %v1200_v15  ;;  %1283 = vmatpush3.bf16.msra.mxu0 %v1412_v37  ;;  %v1415_v41 = vld [vmem:[%s1664_s16 + $0x10] sm:$0xff]   ;;  %v1417_v6 = vld [vmem:[%s1664_s16 + $0x38] sm:$0xff]   ;;  %v1416_v11 = vld [vmem:[%s1664_s16 + $0x28] sm:$0xff]   ;;  %s1198_s14 = sshll.u32 %s1798_s22, 2 }
  0x33   : > { %v491_v23 = vsel %vm484_vm0, %v478_v19, -inf  ;;  %v485_v24 = vsel %vm484_vm0, %v476_v20, -inf  ;;  %v494_v25 = vsel %vm484_vm0, %v479_v21, -inf  ;;  %v488_v26 = vsel %vm484_vm0, %v477_v22, -inf  ;;  %1291 = vmatpush3.bf16.msra.mxu1 %v1413_v38  ;;  %1284 = vmatprep.subr.bf16.mxu0 %v1524_v39  ;;  %v1419_v13 = vld [vmem:[%s1664_s16 + $0x30] sm:$0xff]   ;;  %v1418_v16 = vld [vmem:[%s1664_s16 + $0x20] sm:$0xff]   ;;  %s448_s16 = sadd.s32 %s1198_s14, %s1800_s20 }
  0x34   : > { %492 = vmax.xlane.f32.xlu1 %v491_v23  ;;  %486 = vmax.xlane.f32.xlu0 %v485_v24  ;;  %v500_v31 = vsel %vm484_vm0, %v481_v27, -inf  ;;  %v497_v32 = vsel %vm484_vm0, %v480_v28, -inf  ;;  %v506_v35 = vsel %vm484_vm0, %v483_v33, -inf  ;;  %v503_v36 = vsel %vm484_vm0, %v482_v34, -inf  ;;  %s1199_s15 = sshll.u32 %s448_s16, 3 }
  0x35   : > { %1292 = vmatprep.subr.bf16.mxu1 %v1524_v39  ;;  %vm1525_vm1 = vmmov 0   ;;  %vm852_vm2 = vcmask 1043456   ;;  %vm848_vm3 = vcmask 64512   ;;  %s450_s23 = scalar_lea.vmem %s1780_s5, %s1199_s15  ;;  %vm1046_vm4 = vcmask 130048  }
  0x36   : > { %1286 = vmatprep.mubr.msk.bf16.mxu0 %vm1525_vm1, %v1524_v39  ;;  %1294 = vmatprep.mubr.msk.bf16.mxu1 %vm1525_vm1, %v1524_v39 }
  0x37   : > { %1285 = vmatpush3.bf16.msra.mxu0 %v1414_v40  ;;  %1293 = vmatpush3.bf16.msra.mxu1 %v1415_v41  ;;  %v1259_v40 = vld [vmem:[%s391_s8 + $0x8] sm:$0xff]  }
  0x38   : > { %495 = vmax.xlane.f32.xlu1 %v494_v25  ;;  %489 = vmax.xlane.f32.xlu0 %v488_v26  ;;  %v1213_v26 = vld [vmem:[%s1779_s4 + $0x4] sm:$0xf] }
  0x39   : > { %1298 = vmatprep.subr.bf16.mxu0 %v1524_v39  ;;  %1306 = vmatprep.subr.bf16.mxu1 %v1524_v39 }
  0x3c   : > { %501 = vmax.xlane.f32.xlu1 %v500_v31  ;;  %498 = vmax.xlane.f32.xlu0 %v497_v32 }
  0x40   : > { %507 = vmax.xlane.f32.xlu1 %v506_v35  ;;  %504 = vmax.xlane.f32.xlu0 %v503_v36 }
  0xbd   : > { %v493_v42 = vpop.xlane.xlu1 %492  ;;  %v487_v43 = vpop.xlane.xlu0 %486 }
  0xbe   : > { %v511_v44 = vsub.f32 %v478_v19, %v493_v42  ;;  %v509_v45 = vsub.f32 %v476_v20, %v487_v43  ;;  %v1241_v42 = vld [vmem:[%s391_s8] sm:$0xff]  }
  0xc0   : > { %v521_v46 = vmul.f32 1.442695, %v511_v44  ;;  %v517_v47 = vmul.f32 1.442695, %v509_v45 }
  0xc1   : > { %v496_v48 = vpop.xlane.xlu1 %495  ;;  %v490_v49 = vpop.xlane.xlu0 %489 }
  0xc2   : > { %1420 = vpow2.f32 %v521_v46  ;;  %v512_v50 = vsub.f32 %v479_v21, %v496_v48  ;;  %v510_v51 = vsub.f32 %v477_v22, %v490_v49  ;;  %v1247_v49 = vunpack.c.h.bf16 %v1259_v40 }
  0xc3   : > { %1422 = vpow2.f32 %v517_v47  ;;  %v1246_v47 = vunpack.c.l.bf16 %v1259_v40 }
  0xc4   : > { %v523_v52 = vmul.f32 1.442695, %v512_v50  ;;  %v519_v53 = vmul.f32 1.442695, %v510_v51 }
  0xc5   : > { %v502_v54 = vpop.xlane.xlu1 %501  ;;  %v499_v55 = vpop.xlane.xlu0 %498 }
  0xc6   : > { %1424 = vpow2.f32 %v523_v52  ;;  %v514_v56 = vsub.f32 %v481_v27, %v502_v54  ;;  %v513_v57 = vsub.f32 %v480_v28, %v499_v55  ;;  %v854_v27 = vsel %vm852_vm2, %v1213_v26, 0  ;;  %v845_v28 = vld [vmem:[%s1779_s4] sm:$0xf] }
  0xc7   : > { %1426 = vpow2.f32 %v519_v53  ;;  %v901_v29 = vsel %vm852_vm2, %v845_v28, 0  ;;  %v1242_v52 = vunpack.c.l.bf16 %v1241_v42  ;;  %v1243_v53 = vunpack.c.h.bf16 %v1241_v42 }
  0xc8   : > { %v527_v58 = vmul.f32 1.442695, %v514_v56  ;;  %v525_v59 = vmul.f32 1.442695, %v513_v57 }
  0xc9   : > { %v508_v60 = vpop.xlane.xlu1 %507  ;;  %v505_v61 = vpop.xlane.xlu0 %504 }
  0xca   : > { %v516_v62 = vsub.f32 %v483_v33, %v508_v60  ;;  %v515_v63 = vsub.f32 %v482_v34, %v505_v61  ;;  %1428 = vpow2.f32 %v525_v59  ;;  %v1216_v60 = vld [vmem:[%s1779_s4 + $0x8] sm:$0xf] }
  0xcb   : > { %1430 = vpow2.f32 %v527_v58 }
  0xcc   : > { %v531_v0 = vmul.f32 1.442695, %v516_v62  ;;  %v529_v1 = vmul.f32 1.442695, %v515_v63 }
  0xce   : > { %1432 = vpow2.f32 %v531_v0  ;;  %v1218_v0 = vld [vmem:[%s1779_s4 + $0xc] sm:$0xf] }
  0xcf   : > { %v1421_v2 = vpop.eup %1420  ;;  %1434 = vpow2.f32 %v529_v1 }
  0xd0   : > { %v539_v3 = vsel %vm484_vm0, %v1421_v2, 0.0  ;;  %v1423_v4 = vpop.eup %1422 }
  0xd1   : > { %540 = vadd.xlane.f32.xlu0 %v539_v3  ;;  %v533_v9 = vsel %vm484_vm0, %v1423_v4, 0.0  ;;  %v1260_v3 = vld [vmem:[%s391_s8 + $0x10] sm:$0xff]  }
  0xd3   : > { %v1425_v5 = vpop.eup %1424 }
  0xd4   : > { %v1427_v7 = vpop.eup %1426  ;;  %v542_v8 = vsel %vm484_vm0, %v1425_v5, 0.0  ;;  %v558_v10 = vpack.c.bf16 %v1425_v5, %v1421_v2 }
  0xd5   : > { %543 = vadd.xlane.f32.xlu1 %v542_v8  ;;  %534 = vadd.xlane.f32.xlu0 %v533_v9  ;;  %v557_v12 = vpack.c.bf16 %v1427_v7, %v1423_v4  ;;  %v536_v15 = vsel %vm484_vm0, %v1427_v7, 0.0  ;;  %v1261_v4 = vld [vmem:[%s391_s8 + $0x18] sm:$0xff]   ;;  %v950_v8 = vsel %vm852_vm2, %v1216_v60, 0 }
  0xd6   : > { %1295 = vmatmul.mubr.msk.bf16.vlgmr.msra.gmra.mxu1 %vm484_vm0, %v558_v10 }
  0xd7   : > { %1287 = vmatmul.mubr.msk.bf16.vlgmr.msra.gmra.mxu0 %vm484_vm0, %v557_v12  ;;  %1307 = vmatpush3.bf16.msra.mxu1 %v1417_v6  ;;  %v1429_v14 = vpop.eup %1428 }
  0xd8   : > { %1299 = vmatpush3.bf16.msra.mxu0 %v1416_v11  ;;  %1308 = vmatprep.subr.bf16.mxu1 %v1524_v39  ;;  %v1431_v17 = vpop.eup %1430  ;;  %v545_v18 = vsel %vm484_vm0, %v1429_v14, 0.0  ;;  %v1001_v11 = vsel %vm852_vm2, %v1218_v0, 0 }
  0xd9   : > { %1300 = vmatprep.subr.bf16.mxu0 %v1524_v39  ;;  %537 = vadd.xlane.f32.xlu1 %v536_v15  ;;  %v548_v21 = vsel %vm484_vm0, %v1431_v17, 0.0  ;;  %v559_v22 = vpack.c.bf16 %v1431_v17, %v1429_v14  ;;  %v1254_v14 = vunpack.c.l.bf16 %v1261_v4 }
  0xda   : > { %546 = vadd.xlane.f32.xlu0 %v545_v18  ;;  %1302 = vmatprep.mubr.msk.bf16.mxu0 %vm1525_vm1, %v1524_v39 }
  0xdb   : > { %v1433_v19 = vpop.eup %1432  ;;  %1309 = vmatpush3.bf16.msra.mxu1 %v1419_v13  ;;  %1310 = vmatprep.mubr.msk.bf16.mxu1 %vm1525_vm1, %v1524_v39  ;;  %v1250_v13 = vunpack.c.l.bf16 %v1260_v3 }
  0xdc   : > { %v1435_v20 = vpop.eup %1434  ;;  %1301 = vmatpush3.bf16.msra.mxu0 %v1418_v16  ;;  %1320 = vmatprep.subr.bf16.mxu1 %v1524_v39  ;;  %v554_v25 = vsel %vm484_vm0, %v1433_v19, 0.0 }
  0xdd   : > { %549 = vadd.xlane.f32.xlu1 %v548_v21  ;;  %v560_v23 = vpack.c.bf16 %v1433_v19, %v1435_v20  ;;  %v551_v24 = vsel %vm484_vm0, %v1435_v20, 0.0  ;;  %1314 = vmatprep.subr.bf16.mxu0 %v1524_v39  ;;  %v1251_v20 = vunpack.c.h.bf16 %v1260_v3  ;;  %v1255_v21 = vunpack.c.h.bf16 %v1261_v4 }
  0xde   : > { %552 = vadd.xlane.f32.xlu0 %v551_v24 }
  0xdf   : > { %1303 = vmatmul.mubr.msk.bf16.vlgmr.msra.gmra.mxu0 %vm484_vm0, %v559_v22  ;;  %1311 = vmatmul.mubr.msk.bf16.vlgmr.msra.gmra.mxu1 %vm484_vm0, %v560_v23 }
  0xe0   : > { %1316 = vmatprep.mubr.msk.bf16.mxu0 %vm1525_vm1, %v1524_v39  ;;  %1322 = vmatprep.mubr.msk.bf16.mxu1 %vm1525_vm1, %v1524_v39 }
  0xe1   : > { %555 = vadd.xlane.f32.xlu1 %v554_v25  ;;  %1315 = vmatpush3.bf16.msra.mxu0 %v854_v27 }
  0xe2   : > { %1326 = vmatprep.subr.bf16.mxu0 %v1524_v39  ;;  %1321 = vmatpush3.bf16.msra.mxu1 %v901_v29 }
  0xe3   : > { %1332 = vmatprep.subr.bf16.mxu1 %v1524_v39 }
 0x15a   : > { %v541_v30 = vpop.xlane.xlu0 %540 }
 0x15b   : > { %1436 = vrcp.f32 %v541_v30 }
 0x15e   : > { %v544_v31 = vpop.xlane.xlu1 %543  ;;  %v535_v32 = vpop.xlane.xlu0 %534 }
 0x15f   : > { %1438 = vrcp.f32 %v535_v32 }
 0x160   : > { %1440 = vrcp.f32 %v544_v31 }
 0x162   : > { %v538_v33 = vpop.xlane.xlu1 %537 }
 0x163   : > { %v547_v34 = vpop.xlane.xlu0 %546  ;;  %1442 = vrcp.f32 %v538_v33 }
 0x164   : > { %1444 = vrcp.f32 %v547_v34 }
 0x166   : > { %v550_v35 = vpop.xlane.xlu1 %549 }
 0x167   : > { %v553_v36 = vpop.xlane.xlu0 %552 }
 0x168   : > { %1446 = vrcp.f32 %v553_v36  ;;  %v1437_v43 = vpop.eup %1436 }
 0x169   : > { %1448 = vrcp.f32 %v550_v35 }
 0x16a   : > { %v556_v37 = vpop.xlane.xlu1 %555 }
 0x16b   : > { %1450 = vrcp.f32 %v556_v37 }
 0x16c   : > { %v1439_v45 = vpop.eup %1438 }
 0x16d   : > { %v1441_v50 = vpop.eup %1440 }
 0x170   : > { %v1443_v55 = vpop.eup %1442 }
 0x171   : > { %v1445_v9 = vpop.eup %1444 }
 0x175   : > { %v1447_v12 = vpop.eup %1446 }
 0x176   : > { %v1449_v17 = vpop.eup %1448 }
 0x178   : > { %v1451_v22 = vpop.eup %1450 }
 0x196   : > { %v682_v38 = vpop.f32.mrf.mxu1 }
 0x197   : > { %v626_v41 = vpop.f32.mrf.mxu0  ;;  %v811_v46 = vmul.f32 %v1437_v43, %v682_v38 }
 0x198   : > { %v1296_v44 = vpop.f32.mrf.mxu1  ;;  %v809_v51 = vmul.f32 %v1439_v45, %v626_v41 }
 0x199   : > { %v1288_v48 = vpop.f32.mrf.mxu0  ;;  %v835_v61 = vmul.f32 %v1246_v47, %v811_v46 }
 0x19a   : > { %v685_v54 = vpop.f32.mrf.mxu1  ;;  %v833_v1 = vmul.f32 %v1242_v52, %v809_v51 }
 0x19b   : > { %v629_v56 = vpop.f32.mrf.mxu0  ;;  %v812_v57 = vmul.f32 %v1441_v50, %v685_v54 }
 0x19c   : > { %v810_v58 = vmul.f32 %v1443_v55, %v629_v56  ;;  %v1297_v59 = vpop.f32.mrf.mxu1 }
 0x19d   : > { %v836_v62 = vmul.f32 %v1247_v49, %v812_v57  ;;  %v1289_v63 = vpop.f32.mrf.mxu0 }
 0x19e   : > { %v834_v2 = vmul.f32 %v1243_v53, %v810_v58 }
 0x19f   : > { %v842_v5 = vpack.c.bf16 %v836_v62, %v835_v61  ;;  %v738_v6 = vpop.f32.mrf.mxu0  ;;  %v794_v7 = vpop.f32.mrf.mxu1 }
 0x1a0   : > { %v841_v10 = vpack.c.bf16 %v834_v2, %v833_v1  ;;  %v813_v18 = vmul.f32 %v1445_v9, %v738_v6  ;;  %v815_v19 = vmul.f32 %v1447_v12, %v794_v7 }
 0x1a1   : > { %v1304_v15 = vpop.f32.mrf.mxu0  ;;  %v1312_v16 = vpop.f32.mrf.mxu1  ;;  %1317 = vmatmul.mubr.msk.bf16.vlgmr.msra.gmra.mxu0 %vm848_vm3, %v842_v5 }
 0x1a2   : > { %1323 = vmatmul.mubr.msk.bf16.vlgmr.msra.gmra.mxu1 %vm848_vm3, %v841_v10  ;;  %1327 = vmatpush3.bf16.msra.mxu0 %v950_v8  ;;  %v837_v29 = vmul.f32 %v1250_v13, %v813_v18  ;;  %v839_v30 = vmul.f32 %v1254_v14, %v815_v19 }
 0x1a3   : > { %v741_v23 = vpop.f32.mrf.mxu0  ;;  %v797_v24 = vpop.f32.mrf.mxu1  ;;  %1333 = vmatpush3.bf16.msra.mxu1 %v1001_v11  ;;  %1328 = vmatprep.mubr.msk.bf16.mxu0 %vm1525_vm1, %v1524_v39 }
 0x1a4   : > { %v814_v25 = vmul.f32 %v1449_v17, %v741_v23  ;;  %v816_v26 = vmul.f32 %v1451_v22, %v797_v24  ;;  %1334 = vmatprep.mubr.msk.bf16.mxu1 %vm1525_vm1, %v1524_v39 }
 0x1a5   : > { %v1305_v27 = vpop.f32.mrf.mxu0  ;;  %v1313_v28 = vpop.f32.mrf.mxu1 }
 0x1a6   : > { %v838_v31 = vmul.f32 %v1251_v20, %v814_v25  ;;  %v840_v32 = vmul.f32 %v1255_v21, %v816_v26 }
 0x1a8   : > { %v843_v33 = vpack.c.bf16 %v838_v31, %v837_v29  ;;  %v844_v34 = vpack.c.bf16 %v840_v32, %v839_v30 }
 0x1aa   : > { %1329 = vmatmul.mubr.msk.bf16.vlgmr.msra.gmra.mxu0 %vm848_vm3, %v843_v33  ;;  %1335 = vmatmul.mubr.msk.bf16.vlgmr.msra.gmra.mxu1 %vm848_vm3, %v844_v34 }
 0x261   : > { %v890_v35 = vpop.f32.mrf.mxu0 }
 0x262   : > { %v937_v36 = vpop.f32.mrf.mxu1 }
 0x263   : > { %v1318_v37 = vpop.f32.mrf.mxu0  ;;  %v938_v43 = vadd.f32 %v937_v36, %v890_v35 }
 0x264   : > { %v1324_v39 = vpop.f32.mrf.mxu1 }
 0x265   : > { %v893_v38 = vpop.f32.mrf.mxu0 }
 0x266   : > { %v940_v40 = vpop.f32.mrf.mxu1 }
 0x267   : > { %v1319_v41 = vpop.f32.mrf.mxu0  ;;  %v941_v49 = vadd.f32 %v940_v40, %v893_v38 }
 0x268   : > { %v1325_v42 = vpop.f32.mrf.mxu1 }
 0x26a   : > { %v986_v44 = vpop.f32.mrf.mxu0  ;;  %v1037_v45 = vpop.f32.mrf.mxu1 }
 0x26b   : > { %v993_v46 = vadd.f32 %v986_v44, %v938_v43 }
 0x26c   : > { %v1330_v47 = vpop.f32.mrf.mxu0  ;;  %v1336_v48 = vpop.f32.mrf.mxu1 }
 0x26d   : > { %v1044_v50 = vadd.f32 %v1037_v45, %v993_v46 }
 0x26e   : > { %v989_v51 = vpop.f32.mrf.mxu0  ;;  %v1040_v52 = vpop.f32.mrf.mxu1 }
 0x26f   : > { %1047 = vst.msk [vmem:[%s450_s23] sm:$0xff] %vm1046_vm4, %v1044_v50  ;;  %v994_v53 = vadd.f32 %v989_v51, %v941_v49 }
 0x270   : > { %v1331_v54 = vpop.f32.mrf.mxu0  ;;  %v1337_v55 = vpop.f32.mrf.mxu1 }
 0x271   : > { %v1045_v56 = vadd.f32 %v1040_v52, %v994_v53 }
 0x273   : > { %1048 = vst.msk [vmem:[%s450_s23 + $0x8] sm:$0xff] %vm1046_vm4, %v1045_v56 }
 0x274 PF: > { %s15_s26 = sadd.s32 1, %s1522_s26   ;;  %s1783_s18 = smov %s1494_s19 }
 0x275   : > { %p12_p1 = scmp.ge.s32.totalorder %s15_s26, 6   ;;  %s1784_s19 = smov %s1631_s12 }
 0x276   : > { %s1785_s20 = smov %s1502_s21  ;;  %s1786_s21 = smov %s1628_s11 }
 0x277   : > { %s1787_s22 = smov %s1514_s24  ;;  %s1788_s23 = smov %s1518_s25 }
 0x278   : > { %s1789_s24 = smov %s1792_s27  ;;  %s1790_s25 = smov %s1796_s28 }
 0x279   :  { %14 = sbr.rel (!%p12_p1) target bundleno = 5 (0x5), region = 174 }

</bundles_post_ra>
